<compile_context>
chip_gen: v6e
topology: v6e:2x2x1
jax: 0.10.0
libtpu: 0.0.40
codegen_flags: <defaults>
</compile_context>

<pallas_src>
import functools

import jax
import jax.numpy as jnp
from jax.experimental import pallas as pl
from jax.experimental.pallas import tpu as pltpu


def _round_up(x, m):
    return ((x + m - 1) // m) * m


def _pick_tb(B, cap):
    """Batch tile: must be a multiple of 8 or equal B (output-block sublane rule)."""
    cap = max(1, min(int(cap), 64))
    half8 = (B // 2) // 8 * 8            # multiple-of-8 tile giving >= 2 batch tiles (megacore)
    if half8 >= 8:
        return max(8, min(half8, (cap // 8) * 8 if cap >= 8 else 8))
    if B <= cap:
        return B                         # whole batch as one tile (block dim == full dim is legal)
    return 8 if B > 8 else B             # small, soft overshoot of the tile budget


def _wgap_kernel(x_ref, w_ref, b_ref, o_ref, acc_ref, *,
                 inv_hw, ts, s_total, mask_spatial, mxu_fc):
    # x_ref:   [TB, C, TS]   activation tile, NCHW-native (S on lanes)
    # w_ref:   [C, N_p]      VMEM-resident transposed FC weight (classes lane-padded)
    # b_ref:   [1, N_p]      VMEM-resident FC bias
    # o_ref:   [TB, N_p]     f32 logits block (resident across the spatial axis)
    # acc_ref: [TB, C] f32   pooled-sum accumulator scratch
    s = pl.program_id(1)

    @pl.when(s == 0)
    def _():
        acc_ref[...] = jnp.zeros_like(acc_ref)

    x = x_ref[...]
    if mask_spatial:
        # Last spatial block is partial: zero the out-of-bounds lanes before summing.
        pos = s * ts + jax.lax.broadcasted_iota(jnp.int32, x.shape, 2)
        x = jnp.where(pos < s_total, x, jnp.zeros_like(x))
    # Cross-lane (XLU) spatial reduction, accumulated in f32.
    acc_ref[...] += jnp.sum(x, axis=-1, dtype=jnp.float32)

    @pl.when(s == pl.num_programs(1) - 1)
    def _():
        pooled = acc_ref[...] * inv_hw                 # [TB, C] mean over the true H*W
        w = w_ref[...]
        if mxu_fc:
            lhs = pooled if w.dtype == jnp.float32 else pooled.astype(w.dtype)
            logits = jnp.dot(lhs, w, preferred_element_type=jnp.float32)
        else:
            # Tiny C: unrolled VPU broadcast-MAC (avoids a degenerate MXU contraction).
            wf = w.astype(jnp.float32)
            logits = jnp.zeros((pooled.shape[0], wf.shape[1]), jnp.float32)
            for c in range(wf.shape[0]):
                logits = logits + pooled[:, c:c + 1] * wf[c:c + 1, :]
        logits = logits + b_ref[...].astype(jnp.float32)
        o_ref[...] = logits.astype(o_ref.dtype)


def wgap_forward(x, fc_weight, fc_bias):
    """x: [B, C, H, W]; fc_weight: [classes, C]; fc_bias: [classes] -> f32 [B, classes]."""
    B, C, H, W = x.shape
    classes = fc_weight.shape[0]
    S = H * W
    itemsize = int(jnp.dtype(x.dtype).itemsize)

    # ---- generation-aware budgets -------------------------------------------
    try:
        vmem_cap = int(pltpu.get_tpu_info().vmem_capacity_bytes)
    except Exception:
        vmem_cap = 64 << 20
    if vmem_cap >= (100 << 20):          # v5e / v6e: 128 MiB physical VMEM
        tile_budget = 12 << 20
        vmem_hard_cap = 96 << 20
    else:                                # v7x: 64 MiB physical VMEM
        tile_budget = 8 << 20
        vmem_hard_cap = 52 << 20

    C_al = _round_up(C, 8)               # VMEM sublane padding of the x tile (estimate only)
    N_p = _round_up(classes, 128)        # lane-dense classes axis (params/logits only; tiny)

    # ---- tiling --------------------------------------------------------------
    spatial_floor = min(S, 128)
    tb_cap = max(1, tile_budget // max(1, C_al * spatial_floor * itemsize))
    TB = _pick_tb(B, tb_cap)

    per_spatial = TB * C_al * itemsize
    if S * per_spatial <= tile_budget or S <= 128:
        TS = S                           # single spatial tile: block dim == full dim
    else:
        TS = max(128, (tile_budget // per_spatial) // 128 * 128)
    mask_spatial = (S % TS) != 0
    grid = (pl.cdiv(B, TB), pl.cdiv(S, TS))

    # ---- layout plumbing: only parameter-sized arrays are touched -------------
    x_bcs = x.reshape(B, C, S)                                    # free (contiguous merge)
    w_pad = jnp.pad(fc_weight.T, ((0, 0), (0, N_p - classes)))    # [C, N_p]
    b_pad = jnp.pad(fc_bias, (0, N_p - classes)).reshape(1, N_p)  # [1, N_p]

    mxu_fc = C >= 8                       # tiny C -> unrolled VPU FC path

    # ---- explicit VMEM budget (incl. epilogue f32 temporaries) ----------------
    x_tile_bytes = TB * C_al * _round_up(TS, 128) * itemsize
    w_bytes = C_al * N_p * int(jnp.dtype(fc_weight.dtype).itemsize)
    b_bytes = 8 * N_p * int(jnp.dtype(fc_bias.dtype).itemsize)
    out_bytes = _round_up(TB, 8) * N_p * 4
    acc_bytes = _round_up(TB, 8) * C_al * 4
    tmp_bytes = acc_bytes + out_bytes                 # pooled + logits f32 temporaries
    vmem_need = 2 * (x_tile_bytes + w_bytes + b_bytes + out_bytes) + acc_bytes + tmp_bytes
    vmem_limit = int(min(max(vmem_need + (4 << 20), 32 << 20), vmem_hard_cap))

    # ---- cost estimate (mem-bound custom call) --------------------------------
    flops = B * C * S + 2 * B * C * classes + B * classes
    bytes_accessed = (B * C * S * itemsize
                      + C * classes * int(jnp.dtype(fc_weight.dtype).itemsize)
                      + classes * int(jnp.dtype(fc_bias.dtype).itemsize)
                      + B * classes * 4)

    kernel = functools.partial(_wgap_kernel, inv_hw=float(1.0 / S), ts=TS, s_total=S,
                               mask_spatial=mask_spatial, mxu_fc=mxu_fc)

    out_padded = pl.pallas_call(
        kernel,
        out_shape=jax.ShapeDtypeStruct((B, N_p), jnp.float32),
        grid_spec=pltpu.PrefetchScalarGridSpec(
            num_scalar_prefetch=0,
            grid=grid,
            in_specs=[
                # activation tile: (batch_tile, all channels, spatial_tile)
                pl.BlockSpec((TB, C, TS), lambda b, s: (b, 0, s)),
                # FC weight / bias: constant index_map -> VMEM-resident across the grid.
                pl.BlockSpec((C, N_p), lambda b, s: (0, 0)),
                pl.BlockSpec((1, N_p), lambda b, s: (0, 0)),
            ],
            # Output block constant along the spatial axis (accumulator pattern).
            out_specs=pl.BlockSpec((TB, N_p), lambda b, s: (b, 0)),
            scratch_shapes=[pltpu.VMEM((TB, C), jnp.float32)],
        ),
        compiler_params=pltpu.CompilerParams(
            dimension_semantics=("parallel", "arbitrary"),
            vmem_limit_bytes=vmem_limit,
        ),
        cost_estimate=pl.CostEstimate(flops=flops, transcendentals=0,
                                      bytes_accessed=bytes_accessed),
    )(x_bcs, w_pad, b_pad)

    return out_padded[:, :classes]


if __name__ == "__main__":
    # Small shapes consistent with the module's forward.
    B, C, H, W = 2, 4, 16, 16
    classes = 8

    key = jax.random.PRNGKey(0)
    kx, kw, kb = jax.random.split(key, 3)

    x = jax.random.normal(kx, (B, C, H, W), dtype=jnp.float32)
    # Deterministic synthetic parameters (shapes match torch.nn.Linear(C, classes)).
    fc_weight = jax.random.normal(kw, (classes, C), dtype=jnp.float32) * 0.1
    fc_bias = jax.random.normal(kb, (classes,), dtype=jnp.float32) * 0.1

    logits = jax.block_until_ready(wgap_forward(x, fc_weight, fc_bias))

    # Reference check in plain JAX (same semantics as the PyTorch module).
    pooled_ref = jnp.mean(x, axis=(2, 3))            # AdaptiveAvgPool2d(1) + flatten
    logits_ref = pooled_ref @ fc_weight.T + fc_bias  # nn.Linear
    assert logits.shape == (B, classes)
    assert jnp.allclose(logits, logits_ref, atol=1e-5, rtol=1e-5)

    print("KERNEL_OK")
</pallas_src>

<mosaic_0001>
module attributes {stable_mosaic.version = 11 : i64} {
  func.func @_wgap_kernel(%arg0: i32, %arg1: i32, %arg2: memref<2x4x256xf32, #tpu.memory_space<vmem>>, %arg3: memref<4x128xf32, #tpu.memory_space<vmem>>, %arg4: memref<1x128xf32, #tpu.memory_space<vmem>>, %arg5: memref<2x128xf32, #tpu.memory_space<vmem>>, %arg6: memref<2x4xf32, #tpu.memory_space<vmem>>) attributes {dimension_semantics = [#tpu.dimension_semantics<parallel>, #tpu.dimension_semantics<arbitrary>], iteration_bounds = array<i64: 1, 1>, scalar_prefetch = 0 : i64, scratch_operands = 1 : i64, tpu.core_type = #tpu.core_type<tc>, window_params = [{transform_indices = @transform_0, window_bounds = array<i64: 2, 4, 256>}, {pipeline_mode = #tpu.pipeline_mode<synchronous>, transform_indices = @transform_1, window_bounds = array<i64: 4, 128>}, {pipeline_mode = #tpu.pipeline_mode<synchronous>, transform_indices = @transform_2, window_bounds = array<i64: 1, 128>}, {transform_indices = @transform_3, window_bounds = array<i64: 2, 128>}]} {
    %c0_i32 = arith.constant 0 : i32
    %0 = arith.cmpi eq, %arg1, %c0_i32 : i32
    %1 = arith.extui %0 : i1 to i32
    %c0_i32_0 = arith.constant 0 : i32
    %2 = arith.cmpi ne, %1, %c0_i32_0 : i32
    scf.if %2 {
      %cst_9 = arith.constant 0.000000e+00 : f32
      %11 = vector.broadcast %cst_9 : f32 to vector<2x4xf32>
      %c0_10 = arith.constant 0 : index
      %c0_11 = arith.constant 0 : index
      %12 = vector.load %arg6[%c0_10, %c0_11] : memref<2x4xf32, #tpu.memory_space<vmem>>, vector<2x4xf32>
      tpu.vector_store %arg6[%c0_10, %c0_11], %11 {strides = array<i32>} : memref<2x4xf32, #tpu.memory_space<vmem>>, vector<2x4xf32>,
    } else {
    }
    %c0 = arith.constant 0 : index
    %c0_1 = arith.constant 0 : index
    %c0_2 = arith.constant 0 : index
    %3 = vector.load %arg2[%c0, %c0_1, %c0_2] : memref<2x4x256xf32, #tpu.memory_space<vmem>>, vector<2x4x256xf32>
    %c0_3 = arith.constant 0 : index
    %c0_4 = arith.constant 0 : index
    %4 = vector.load %arg6[%c0_3, %c0_4] : memref<2x4xf32, #tpu.memory_space<vmem>>, vector<2x4xf32>
    %cst = arith.constant dense<0.000000e+00> : vector<2x4xf32>
    %5 = vector.multi_reduction <add>, %3, %cst [2] : vector<2x4x256xf32> to vector<2x4xf32>
    %6 = arith.addf %4, %5 : vector<2x4xf32>
    %c0_5 = arith.constant 0 : index
    %c0_6 = arith.constant 0 : index
    %7 = vector.load %arg6[%c0_5, %c0_6] : memref<2x4xf32, #tpu.memory_space<vmem>>, vector<2x4xf32>
    tpu.vector_store %arg6[%c0_5, %c0_6], %6 {strides = array<i32>} : memref<2x4xf32, #tpu.memory_space<vmem>>, vector<2x4xf32>,
    %c0_i32_7 = arith.constant 0 : i32
    %8 = arith.cmpi eq, %arg1, %c0_i32_7 : i32
    %9 = arith.extui %8 : i1 to i32
    %c0_i32_8 = arith.constant 0 : i32
    %10 = arith.cmpi ne, %9, %c0_i32_8 : i32
    scf.if %10 {
      %c0_9 = arith.constant 0 : index
      %c0_10 = arith.constant 0 : index
      %11 = vector.load %arg6[%c0_9, %c0_10] : memref<2x4xf32, #tpu.memory_space<vmem>>, vector<2x4xf32>
      %cst_11 = arith.constant 3.906250e-03 : f32
      %12 = vector.broadcast %cst_11 : f32 to vector<2x4xf32>
      %13 = arith.mulf %11, %12 : vector<2x4xf32>
      %c0_12 = arith.constant 0 : index
      %c0_13 = arith.constant 0 : index
      %14 = vector.load %arg3[%c0_12, %c0_13] : memref<4x128xf32, #tpu.memory_space<vmem>>, vector<4x128xf32>
      %cst_14 = arith.constant 0.000000e+00 : f32
      %15 = vector.broadcast %cst_14 : f32 to vector<2x128xf32>
      %16 = vector.extract_strided_slice %13 {offsets = [0, 0], sizes = [2, 1], strides = [1, 1]} : vector<2x4xf32> to vector<2x1xf32>
      %17 = vector.extract_strided_slice %14 {offsets = [0, 0], sizes = [1, 128], strides = [1, 1]} : vector<4x128xf32> to vector<1x128xf32>
      %18 = vector.broadcast %16 : vector<2x1xf32> to vector<2x128xf32>
      %19 = vector.broadcast %17 : vector<1x128xf32> to vector<2x128xf32>
      %20 = arith.mulf %18, %19 : vector<2x128xf32>
      %21 = arith.addf %15, %20 : vector<2x128xf32>
      %22 = vector.extract_strided_slice %13 {offsets = [0, 1], sizes = [2, 1], strides = [1, 1]} : vector<2x4xf32> to vector<2x1xf32>
      %23 = vector.extract_strided_slice %14 {offsets = [1, 0], sizes = [1, 128], strides = [1, 1]} : vector<4x128xf32> to vector<1x128xf32>
      %24 = vector.broadcast %22 : vector<2x1xf32> to vector<2x128xf32>
      %25 = vector.broadcast %23 : vector<1x128xf32> to vector<2x128xf32>
      %26 = arith.mulf %24, %25 : vector<2x128xf32>
      %27 = arith.addf %21, %26 : vector<2x128xf32>
      %28 = vector.extract_strided_slice %13 {offsets = [0, 2], sizes = [2, 1], strides = [1, 1]} : vector<2x4xf32> to vector<2x1xf32>
      %29 = vector.extract_strided_slice %14 {offsets = [2, 0], sizes = [1, 128], strides = [1, 1]} : vector<4x128xf32> to vector<1x128xf32>
      %30 = vector.broadcast %28 : vector<2x1xf32> to vector<2x128xf32>
      %31 = vector.broadcast %29 : vector<1x128xf32> to vector<2x128xf32>
      %32 = arith.mulf %30, %31 : vector<2x128xf32>
      %33 = arith.addf %27, %32 : vector<2x128xf32>
      %34 = vector.extract_strided_slice %13 {offsets = [0, 3], sizes = [2, 1], strides = [1, 1]} : vector<2x4xf32> to vector<2x1xf32>
      %35 = vector.extract_strided_slice %14 {offsets = [3, 0], sizes = [1, 128], strides = [1, 1]} : vector<4x128xf32> to vector<1x128xf32>
      %36 = vector.broadcast %34 : vector<2x1xf32> to vector<2x128xf32>
      %37 = vector.broadcast %35 : vector<1x128xf32> to vector<2x128xf32>
      %38 = arith.mulf %36, %37 : vector<2x128xf32>
      %39 = arith.addf %33, %38 : vector<2x128xf32>
      %c0_15 = arith.constant 0 : index
      %c0_16 = arith.constant 0 : index
      %40 = vector.load %arg4[%c0_15, %c0_16] : memref<1x128xf32, #tpu.memory_space<vmem>>, vector<1x128xf32>
      %41 = vector.broadcast %40 : vector<1x128xf32> to vector<2x128xf32>
      %42 = arith.addf %39, %41 : vector<2x128xf32>
      %c0_17 = arith.constant 0 : index
      %c0_18 = arith.constant 0 : index
      %43 = vector.load %arg5[%c0_17, %c0_18] : memref<2x128xf32, #tpu.memory_space<vmem>>, vector<2x128xf32>
      tpu.vector_store %arg5[%c0_17, %c0_18], %42 {strides = array<i32>} : memref<2x128xf32, #tpu.memory_space<vmem>>, vector<2x128xf32>,
    } else {
    }
    return
  }
  func.func @transform_0(%arg0: i32, %arg1: i32) -> (i32, i32, i32) {
    %c0_i32 = arith.constant 0 : i32
    %c0_i32_0 = arith.constant 0 : i32
    return %arg0, %c0_i32, %arg1 : i32, i32, i32
  }
  func.func @transform_1(%arg0: i32, %arg1: i32) -> (i32, i32) {
    %c0_i32 = arith.constant 0 : i32
    %c0_i32_0 = arith.constant 0 : i32
    %c0_i32_1 = arith.constant 0 : i32
    return %c0_i32, %c0_i32_0 : i32, i32
  }
  func.func @transform_2(%arg0: i32, %arg1: i32) -> (i32, i32) {
    %c0_i32 = arith.constant 0 : i32
    %c0_i32_0 = arith.constant 0 : i32
    %c0_i32_1 = arith.constant 0 : i32
    return %c0_i32, %c0_i32_0 : i32, i32
  }
  func.func @transform_3(%arg0: i32, %arg1: i32) -> (i32, i32) {
    %c0_i32 = arith.constant 0 : i32
    %c0_i32_0 = arith.constant 0 : i32
    return %arg0, %c0_i32 : i32, i32
  }
}

</mosaic_0001>

<bundles_post_ra>
// kernel: tpu_custom_call.1
= control target key start
LH: loop header
LB: loop body
LE: loop exit
PB: predicated region body
PF: predicated region fallthrough
CT: control target
= control target key end

     0   :  { %8 = vsyncpa [#allocation4], 0  ;;  %s285_s0 = inlined_call_operand.hbm [shape: f32[2,4,256], index: 0, kind: input, shape index: {}]   ;;  %s286_s1 = inlined_call_operand.hbm [shape: f32[4,128], index: 1, kind: input, shape index: {}]   ;;  %s287_s2 = inlined_call_operand.vmem [shape: f32[1,128], index: 2, kind: input, shape index: {}]   ;;  %s288_s3 = inlined_call_operand.hbm [shape: f32[2,128], index: 3, kind: output, shape index: {}]  }
   0x1   :  { %9 = vsyncpa [#allocation7], 0 }
   0x2   :  { %10 = vsyncpa [#allocation5], 0  ;;  %s241_s12 = smov [#allocation3]  }
   0x3   :  { %s16_s13 = sshll.u32 %s241_s12, 4  ;;  %s17_s13 = int_to_ptr.vmem [resolvable:$true] %s16_s13 }
   0x4   :  { %s183_s14 = scalar_lea.vmem %s17_s13, 256  ;;  %p188_p1 = scmp.lt.s32.totalorder %s17_s13, %s17_s13 }
   0x5   :  { %p184_p0 = scmp.ne.s32.totalorder %s17_s13, %s183_s14  ;;  %p189_p2 = scmp.lt.s32.totalorder %s183_s14, %s183_s14 }
   0x7   :  { %p190_p3 = por %p189_p2, %p188_p1 }
   0x9   :  { %p191_p4 = pnand %p190_p3, %p184_p0 }
   0xb   :  { %194 = shalt.err (!%p191_p4)
}
   0xc   :  { %s242_s15 = smov 128   ;;  %s243_s16 = smov 8  }
   0xd   :  { %22 = dma.hbm_to_vmem [thread:$0]  %s285_s0, 256, %s17_s13, [#allocation4], %s242_s15, %s242_s15, %s243_s16  }
   0xe   :  { %s244_s19 = smov [#allocation6]  }
   0xf   :  { %s29_s20 = sshll.u32 %s244_s19, 4  ;;  %s30_s20 = int_to_ptr.vmem [resolvable:$true] %s29_s20 }
  0x10   :  { %s203_s21 = scalar_lea.vmem %s30_s20, 64  ;;  %p208_p6 = scmp.lt.s32.totalorder %s30_s20, %s30_s20 }
  0x11   :  { %p204_p5 = scmp.ne.s32.totalorder %s30_s20, %s203_s21  ;;  %p209_p7 = scmp.lt.s32.totalorder %s203_s21, %s203_s21 }
  0x13   :  { %p210_p8 = por %p209_p7, %p208_p6 }
  0x15   :  { %p211_p9 = pnand %p210_p8, %p204_p5 }
  0x17   :  { %214 = shalt.err (!%p211_p9)
}
  0x18   :  { %32 = dma.hbm_to_vmem [thread:$0]  %s286_s1, 64, %s30_s20, [#allocation7]  }
  0x19   :  { %235 = dma.done.wait [#allocation4], 256  }
  0x1a   :  { %236 = vsyncadd [#allocation4], 4294967040 }
  0x1b   :  { %237 = dma.done.wait [#allocation7], 64  }
  0x1c   :  { %238 = vsyncadd [#allocation7], 4294967232  ;;  %vm56_vm0 = vcmask 1043456   ;;  %v47_v0 = vld [vmem:[#allocation3] sm:$0xff]  ;;  %v48_v1 = vld [vmem:[#allocation3 + $0x8] sm:$0xff]  ;;  %vm45_vm1 = vcmask 25600   ;;  %v69_v13 = vlaneseq }
  0x1d   :  { %v52_v2 = vcombine.high %v47_v0, %v47_v0  ;;  %v57_v3 = vsel %vm56_vm0, %v47_v0, 0.0  ;;  %v53_v4 = vcombine.high %v48_v1, %v48_v1  ;;  %v62_v6 = vsel %vm56_vm0, %v48_v1, 0.0  ;;  %v90_v30 = vld [vmem:[#allocation6] sm:$0xf]  ;;  %v157_v47 = vld [vmem:[%s287_s2] ss:$0 sm:$0xff] }
  0x1e   :  { %v245_v10 = vmov 0.0   ;;  %v246_v11 = vmov 2   ;;  %v247_v12 = vmov 0   ;;  %v70_v14 = vand.u32 127, %v69_v13  ;;  %s250_s24 = smov [#allocation8]  }
  0x1f   :  { %v58_v5 = vsel %vm56_vm0, %v52_v2, 0.0  ;;  %v63_v7 = vsel %vm56_vm0, %v53_v4, 0.0  ;;  %46 = vst.msk [vmem:[#allocation2] sm:$0x3] %vm45_vm1, %v245_v10  ;;  %170 = vset.pattern.permute.xlu0 %v246_v11  ;;  %168 = vset.pattern.permute.xlu1 %v247_v12  ;;  %v72_v15 = vshrl.u32 %v69_v13, 7  ;;  %vm79_vm2 = vcmask 1041409  }
  0x20   :  { %v59_v8 = vadd.f32 %v58_v5, %v57_v3  ;;  %v64_v9 = vadd.f32 %v63_v7, %v62_v6  ;;  %v248_v26 = vmov 1   ;;  %v249_v27 = vmov 3   ;;  %s147_s25 = sshll.u32 %s250_s24, 4  ;;  %s148_s25 = int_to_ptr.vmem [resolvable:$true] %s147_s25 }
  0x21   :  { %v73_v17 = vsub.s32 %v70_v14, %v72_v15  ;;  %v98_v28 = vsub.s32 0, %v72_v15  ;;  %v108_v29 = vsub.s32 1, %v72_v15  ;;  %v118_v31 = vsub.s32 2, %v72_v15  ;;  %s215_s26 = scalar_lea.vmem %s148_s25, 32  ;;  %p220_p11 = scmp.lt.s32.totalorder %s148_s25, %s148_s25 }
  0x22   :  { %60 = vadd.xlane.f32.xlu0 %v59_v8  ;;  %v128_v35 = vsub.s32 3, %v72_v15  ;;  %p216_p10 = scmp.ne.s32.totalorder %s148_s25, %s215_s26  ;;  %p221_p12 = scmp.lt.s32.totalorder %s215_s26, %s215_s26 }
  0x23   :  { %v99_v33 = vrot.slane %v90_v30, %v98_v28  ;;  %v109_v34 = vrot.slane %v90_v30, %v108_v29  ;;  %v119_v36 = vrot.slane %v90_v30, %v118_v31 }
  0x24   :  { %v129_v41 = vrot.slane %v90_v30, %v128_v35  ;;  %p222_p13 = por %p221_p12, %p220_p11 }
  0x26   :  { %65 = vadd.xlane.f32.xlu0 %v64_v9  ;;  %v49_v20 = vld [vmem:[#allocation2] sm:$0x3]  ;;  %p223_p0 = pnand %p222_p13, %p216_p10 }
  0xab   :  { %v61_v16 = vpop.xlane.xlu0 %60 }
  0xac   :  { %v74_v19 = vrot.slane %v61_v16, %v73_v17 }
  0xaf   :  { %v66_v18 = vpop.xlane.xlu0 %65 }
  0xb0   :  { %v78_v21 = vrot.slane %v66_v18, %v73_v17 }
  0xb2   :  { %v80_v22 = vsel %vm79_vm2, %v78_v21, %v74_v19 }
  0xb3   :  { %v82_v23 = vadd.f32 %v80_v22, %v49_v20 }
  0xb5   :  { %84 = vst.msk [vmem:[#allocation2] sm:$0x3] %vm45_vm1, %v82_v23 }
  0xbc   :  { %v88_v24 = vld [vmem:[#allocation2] sm:$0x3] }
  0xbd   :  { %v89_v25 = vmul.f32 0.00390625, %v88_v24 }
  0xbf   :  { %113 = vperm.xlu0 %170, %v89_v25   ;;  %93 = vperm.xlu1 %168, %v89_v25  }
  0xc3   :  { %169 = vset.pattern.permute.xlu1 %v248_v26  ;;  %172 = vset.pattern.permute.xlu0 %v249_v27 }
  0xc4   :  { %103 = vperm.xlu1 %169, %v89_v25  }
  0xc8   :  { %171 = vset.pattern.permute.xlu1 %v249_v27 }
  0xc9   :  { %123 = vperm.xlu1 %171, %v89_v25  }
 0x13a   :  { %v94_v32 = vpop.permute.xlu1 %93  ;;  %v114_v37 = vpop.permute.xlu0 %113 }
 0x13b   :  { %v100_v39 = vmul.f32 %v99_v33, %v94_v32  ;;  %v120_v42 = vmul.f32 %v119_v36, %v114_v37 }
 0x13f   :  { %v104_v38 = vpop.permute.xlu1 %103 }
 0x140   :  { %v110_v40 = vmul.f32 %v109_v34, %v104_v38 }
 0x142   :  { %v111_v43 = vadd.f32 %v110_v40, %v100_v39 }
 0x144   :  { %v121_v44 = vadd.f32 %v120_v42, %v111_v43  ;;  %v124_v45 = vpop.permute.xlu1 %123 }
 0x145   :  { %v130_v46 = vmul.f32 %v129_v41, %v124_v45 }
 0x147   :  { %v131_v48 = vadd.f32 %v130_v46, %v121_v44 }
 0x149   :  { %v139_v49 = vadd.f32 %v157_v47, %v131_v48 }
 0x14b   :  { %140 = vst [vmem:[#allocation8] sm:$0x3] %v139_v49 }
 0x14c   :  { %226 = shalt.err (!%p223_p0)
}
 0x14d   :  { %150 = dma.vmem_to_hbm [thread:$0]  %s148_s25, 32, %s288_s3, [#allocation5]  }
 0x14e   :  { %239 = dma.done.wait [#allocation5], 32  }
 0x14f   :  { %240 = vsyncadd [#allocation5], 4294967264 }
 0x150   :  { %154 = vsyncpa [#allocation4], 1 }
 0x151   :  { %155 = vsyncpa [#allocation7], 1 }
 0x152   :  { %156 = vsyncpa [#allocation5], 1 }

</bundles_post_ra>
